<compile_context>
chip_gen: v5e
topology: v5e:2x2
jax: 0.10.0
libtpu: 0.0.40
codegen_flags: <defaults>
</compile_context>

<pallas_src>
import functools

import jax
import jax.numpy as jnp
from jax.experimental import pallas as pl
from jax.experimental.pallas import tpu as pltpu

IN_DIM = 4
HIDDEN = 256
OUT_DIM = 4
OUT_PAD = 8            # fc_2 output rows padded to one sublane group (8)
TB_MAX = 2048          # max batch lanes per grid step (multiple of 128)
TC = 256               # inner lane chunk; keeps per-chunk intermediates small


def _round_up(n, m):
    return ((n + m - 1) // m) * m


def mlp_kernel(xT_ref, w1_ref, b1_ref, w2_ref, b2_ref, o_ref, *, tc, vpu_dtype):
    """One grid step: a TB-lane batch tile, processed in lane chunks of `tc`."""
    tb = o_ref.shape[1]
    w1 = w1_ref[...].astype(vpu_dtype)          # (256, 4)
    b1 = b1_ref[...].astype(vpu_dtype)          # (256, 1)  lane-broadcasts
    w2 = w2_ref[...]                            # (8, 256)  MXU dtype
    b2 = b2_ref[...]                            # (8, 1)    f32

    for c in range(tb // tc):                   # static unroll over lane chunks
        lo = c * tc
        xc = xT_ref[:, lo:lo + tc].astype(vpu_dtype)        # (4, tc)

        # ---- fc_1 on the VPU: hT = W1 @ xT + b1 as K=4 unrolled FMAs ----
        # (256,1) column * (1,tc) sublane-broadcast row -> (256, tc)
        h = w1[:, 0:1] * xc[0:1, :] + b1
        for k in range(1, IN_DIM):
            h = h + w1[:, k:k + 1] * xc[k:k + 1, :]
        h = jnp.maximum(h, 0).astype(w2.dtype)              # ReLU + MXU cast

        # ---- fc_2 on the MXU: yT = W2 @ hT (f32 accumulation) + b2 ----
        y = jnp.dot(w2, h, preferred_element_type=jnp.float32) + b2   # (8, tc)
        o_ref[:, lo:lo + tc] = y.astype(o_ref.dtype)        # lane-dense store


def linear_mlp(x, w1, b1, w2, b2, *, mxu_dtype=jnp.bfloat16,
               vpu_dtype=jnp.float32, tb_max=TB_MAX):
    """x: (B, 4). w1: (256, 4) PyTorch layout, b1: (256,), w2: (4, 256), b2: (4,).

    mxu_dtype: dtype fed to the fc_2 MXU matmul (bf16 default; f32 for strict).
    vpu_dtype: dtype of the fc_1/ReLU elementwise chain (f32 default; bf16 is
               fine on v6e/v7x which have a bf16 VALU — keep f32 on v5e).
    """
    B = x.shape[0]
    if B == 0:
        return jnp.zeros((0, OUT_DIM), x.dtype)

    # ---- Weight prep (once, outside the kernel) ----
    w1_f = w1.astype(jnp.float32)                                      # (256, 4)
    b1_c = b1.reshape(HIDDEN, 1).astype(jnp.float32)                   # (256, 1)
    w2_pad = jnp.zeros((OUT_PAD, HIDDEN), mxu_dtype)
    w2_pad = w2_pad.at[:OUT_DIM].set(w2.astype(mxu_dtype))             # (8, 256)
    b2_pad = jnp.zeros((OUT_PAD, 1), jnp.float32)
    b2_pad = b2_pad.at[:OUT_DIM, 0].set(b2.astype(jnp.float32))        # (8, 1)

    # ---- Batch (lane) tiling: TB multiple of 128, balanced tile count ----
    B_lane = _round_up(B, 128)
    if B_lane < 256:
        TB = B_lane                                  # single tiny tile
    elif B_lane <= tb_max:
        TB = _round_up(B_lane // 2, 128)             # 2 tiles -> both v7x cores busy
    else:
        n = pl.cdiv(B_lane, tb_max)
        n += n % 2                                   # even tile count (megacore balance)
        TB = _round_up(pl.cdiv(B_lane, n), 128)
    B_pad = _round_up(B_lane, TB)
    n_tiles = B_pad // TB
    tc = TC if TB % TC == 0 else 128

    # Transpose + pad x into the tiny lane-major layout (4, B_pad).
    xT = jnp.zeros((IN_DIM, B_pad), jnp.float32)
    xT = xT.at[:, :B].set(x.T.astype(jnp.float32))

    kernel = functools.partial(mlp_kernel, tc=tc, vpu_dtype=vpu_dtype)
    out_t = pl.pallas_call(
        kernel,
        out_shape=jax.ShapeDtypeStruct((OUT_PAD, B_pad), jnp.float32),
        grid=(n_tiles,),
        in_specs=[
            # x / out stream over the batch grid axis; weights & biases stay
            # resident in VMEM (constant index_maps, ~10 KB total).
            pl.BlockSpec((IN_DIM, TB), lambda i: (0, i)),
            pl.BlockSpec((HIDDEN, IN_DIM), lambda i: (0, 0)),
            pl.BlockSpec((HIDDEN, 1), lambda i: (0, 0)),
            pl.BlockSpec((OUT_PAD, HIDDEN), lambda i: (0, 0)),
            pl.BlockSpec((OUT_PAD, 1), lambda i: (0, 0)),
        ],
        out_specs=pl.BlockSpec((OUT_PAD, TB), lambda i: (0, i)),
        compiler_params=pltpu.CompilerParams(
            dimension_semantics=("parallel",),   # shard batch tiles across TCs (v7x)
        ),
    )(xT, w1_f, b1_c, w2_pad, b2_pad)

    # Tiny slice/transpose back: touches only 32 B per batch row.
    return out_t[:OUT_DIM, :B].T.astype(x.dtype)


def reference_mlp(x, w1, b1, w2, b2):
    h = x @ w1.T + b1
    h = jnp.maximum(h, 0.0)
    return h @ w2.T + b2


if __name__ == "__main__":
    key = jax.random.PRNGKey(0)
    k_x, k_w1, k_b1, k_w2, k_b2 = jax.random.split(key, 5)

    B = 8
    x = jax.random.normal(k_x, (B, IN_DIM), dtype=jnp.float32)

    # PyTorch nn.Linear default-init-style parameters:
    #   fc_1.weight: (256, 4), fc_1.bias: (256,)
    #   fc_2.weight: (4, 256), fc_2.bias: (4,)
    bound1 = 1.0 / jnp.sqrt(jnp.float32(IN_DIM))
    bound2 = 1.0 / jnp.sqrt(jnp.float32(HIDDEN))
    w1 = jax.random.uniform(k_w1, (HIDDEN, IN_DIM), jnp.float32, -bound1, bound1)
    b1 = jax.random.uniform(k_b1, (HIDDEN,), jnp.float32, -bound1, bound1)
    w2 = jax.random.uniform(k_w2, (OUT_DIM, HIDDEN), jnp.float32, -bound2, bound2)
    b2 = jax.random.uniform(k_b2, (OUT_DIM,), jnp.float32, -bound2, bound2)

    ref = reference_mlp(x, w1, b1, w2, b2)

    # Strict f32 path (MXU and VPU in f32): must match the reference tightly.
    out_f32 = jax.block_until_ready(
        linear_mlp(x, w1, b1, w2, b2, mxu_dtype=jnp.float32))
    assert out_f32.shape == (B, OUT_DIM)
    assert jnp.allclose(out_f32, ref, atol=1e-5, rtol=1e-5), "f32 mismatch vs reference"

    # Default path (bf16 MXU inputs, f32 accumulation + f32 VPU chain).
    out_bf16 = jax.block_until_ready(linear_mlp(x, w1, b1, w2, b2))
    assert out_bf16.shape == (B, OUT_DIM)
    assert jnp.allclose(out_bf16, ref, atol=5e-2, rtol=5e-2), "bf16 mismatch vs reference"

    # bf16 VPU chain (intended for v6e/v7x which have a bf16 VALU).
    out_bb = jax.block_until_ready(
        linear_mlp(x, w1, b1, w2, b2, vpu_dtype=jnp.bfloat16))
    assert out_bb.shape == (B, OUT_DIM)
    assert jnp.allclose(out_bb, ref, atol=5e-2, rtol=5e-2), "bf16-VPU mismatch vs reference"

    # Non-128-multiple batch: exercises lane padding + final slice correctness.
    B2 = 37
    x2 = jax.random.normal(k_x, (B2, IN_DIM), dtype=jnp.float32)
    ref2 = reference_mlp(x2, w1, b1, w2, b2)
    out2 = jax.block_until_ready(
        linear_mlp(x2, w1, b1, w2, b2, mxu_dtype=jnp.float32))
    assert out2.shape == (B2, OUT_DIM)
    assert jnp.allclose(out2, ref2, atol=1e-5, rtol=1e-5), "ragged-batch mismatch"

    print("KERNEL_OK")
</pallas_src>

<mosaic_0001>
module attributes {stable_mosaic.version = 11 : i64} {
  func.func @mlp_kernel(%arg0: i32, %arg1: memref<4x128xf32, #tpu.memory_space<vmem>>, %arg2: memref<256x4xf32, #tpu.memory_space<vmem>>, %arg3: memref<256x1xf32, #tpu.memory_space<vmem>>, %arg4: memref<8x256xf32, #tpu.memory_space<vmem>>, %arg5: memref<8x1xf32, #tpu.memory_space<vmem>>, %arg6: memref<8x128xf32, #tpu.memory_space<vmem>>) attributes {dimension_semantics = [#tpu.dimension_semantics<parallel>], iteration_bounds = array<i64: 1>, scalar_prefetch = 0 : i64, scratch_operands = 0 : i64, tpu.core_type = #tpu.core_type<tc>, window_params = [{transform_indices = @transform_0, window_bounds = array<i64: 4, 128>}, {pipeline_mode = #tpu.pipeline_mode<synchronous>, transform_indices = @transform_1, window_bounds = array<i64: 256, 4>}, {pipeline_mode = #tpu.pipeline_mode<synchronous>, transform_indices = @transform_2, window_bounds = array<i64: 256, 1>}, {pipeline_mode = #tpu.pipeline_mode<synchronous>, transform_indices = @transform_3, window_bounds = array<i64: 8, 256>}, {pipeline_mode = #tpu.pipeline_mode<synchronous>, transform_indices = @transform_4, window_bounds = array<i64: 8, 1>}, {transform_indices = @transform_5, window_bounds = array<i64: 8, 128>}]} {
    %c0 = arith.constant 0 : index
    %c0_0 = arith.constant 0 : index
    %0 = vector.load %arg2[%c0, %c0_0] : memref<256x4xf32, #tpu.memory_space<vmem>>, vector<256x4xf32>
    %c0_1 = arith.constant 0 : index
    %c0_2 = arith.constant 0 : index
    %1 = vector.load %arg3[%c0_1, %c0_2] : memref<256x1xf32, #tpu.memory_space<vmem>>, vector<256x1xf32>
    %c0_3 = arith.constant 0 : index
    %c0_4 = arith.constant 0 : index
    %2 = vector.load %arg4[%c0_3, %c0_4] : memref<8x256xf32, #tpu.memory_space<vmem>>, vector<8x256xf32>
    %c0_5 = arith.constant 0 : index
    %c0_6 = arith.constant 0 : index
    %3 = vector.load %arg5[%c0_5, %c0_6] : memref<8x1xf32, #tpu.memory_space<vmem>>, vector<8x1xf32>
    %c0_7 = arith.constant 0 : index
    %c0_8 = arith.constant 0 : index
    %4 = vector.load %arg1[%c0_7, %c0_8] : memref<4x128xf32, #tpu.memory_space<vmem>>, vector<4x128xf32>
    %5 = vector.extract_strided_slice %0 {offsets = [0, 0], sizes = [256, 1], strides = [1, 1]} : vector<256x4xf32> to vector<256x1xf32>
    %6 = vector.extract_strided_slice %4 {offsets = [0, 0], sizes = [1, 128], strides = [1, 1]} : vector<4x128xf32> to vector<1x128xf32>
    %7 = vector.broadcast %5 : vector<256x1xf32> to vector<256x128xf32>
    %8 = vector.broadcast %6 : vector<1x128xf32> to vector<256x128xf32>
    %9 = arith.mulf %7, %8 : vector<256x128xf32>
    %10 = vector.broadcast %1 : vector<256x1xf32> to vector<256x128xf32>
    %11 = arith.addf %9, %10 : vector<256x128xf32>
    %12 = vector.extract_strided_slice %0 {offsets = [0, 1], sizes = [256, 1], strides = [1, 1]} : vector<256x4xf32> to vector<256x1xf32>
    %13 = vector.extract_strided_slice %4 {offsets = [1, 0], sizes = [1, 128], strides = [1, 1]} : vector<4x128xf32> to vector<1x128xf32>
    %14 = vector.broadcast %12 : vector<256x1xf32> to vector<256x128xf32>
    %15 = vector.broadcast %13 : vector<1x128xf32> to vector<256x128xf32>
    %16 = arith.mulf %14, %15 : vector<256x128xf32>
    %17 = arith.addf %11, %16 : vector<256x128xf32>
    %18 = vector.extract_strided_slice %0 {offsets = [0, 2], sizes = [256, 1], strides = [1, 1]} : vector<256x4xf32> to vector<256x1xf32>
    %19 = vector.extract_strided_slice %4 {offsets = [2, 0], sizes = [1, 128], strides = [1, 1]} : vector<4x128xf32> to vector<1x128xf32>
    %20 = vector.broadcast %18 : vector<256x1xf32> to vector<256x128xf32>
    %21 = vector.broadcast %19 : vector<1x128xf32> to vector<256x128xf32>
    %22 = arith.mulf %20, %21 : vector<256x128xf32>
    %23 = arith.addf %17, %22 : vector<256x128xf32>
    %24 = vector.extract_strided_slice %0 {offsets = [0, 3], sizes = [256, 1], strides = [1, 1]} : vector<256x4xf32> to vector<256x1xf32>
    %25 = vector.extract_strided_slice %4 {offsets = [3, 0], sizes = [1, 128], strides = [1, 1]} : vector<4x128xf32> to vector<1x128xf32>
    %26 = vector.broadcast %24 : vector<256x1xf32> to vector<256x128xf32>
    %27 = vector.broadcast %25 : vector<1x128xf32> to vector<256x128xf32>
    %28 = arith.mulf %26, %27 : vector<256x128xf32>
    %29 = arith.addf %23, %28 : vector<256x128xf32>
    %cst = arith.constant 0.000000e+00 : f32
    %30 = vector.broadcast %cst : f32 to vector<256x128xf32>
    %31 = arith.maximumf %29, %30 : vector<256x128xf32>
    %cst_9 = arith.constant dense<0.000000e+00> : vector<8x128xf32>
    %32 = tpu.matmul %2, %31, %cst_9 {dimension_numbers = #tpu.dot_dimension_numbers<[1], [0], [0], [1], [0, 0, 1, 1], [], []>} : vector<8x256xf32>, vector<256x128xf32>, vector<8x128xf32> -> vector<8x128xf32>
    %33 = vector.broadcast %3 : vector<8x1xf32> to vector<8x128xf32>
    %34 = arith.addf %32, %33 : vector<8x128xf32>
    %c0_10 = arith.constant 0 : index
    %c0_11 = arith.constant 0 : index
    %35 = vector.load %arg6[%c0_10, %c0_11] : memref<8x128xf32, #tpu.memory_space<vmem>>, vector<8x128xf32>
    tpu.vector_store %arg6[%c0_10, %c0_11], %34 {strides = array<i32>} : memref<8x128xf32, #tpu.memory_space<vmem>>, vector<8x128xf32>,
    return
  }
  func.func @transform_0(%arg0: i32) -> (i32, i32) {
    %c0_i32 = arith.constant 0 : i32
    %c0_i32_0 = arith.constant 0 : i32
    return %c0_i32, %arg0 : i32, i32
  }
  func.func @transform_1(%arg0: i32) -> (i32, i32) {
    %c0_i32 = arith.constant 0 : i32
    %c0_i32_0 = arith.constant 0 : i32
    %c0_i32_1 = arith.constant 0 : i32
    return %c0_i32, %c0_i32_0 : i32, i32
  }
  func.func @transform_2(%arg0: i32) -> (i32, i32) {
    %c0_i32 = arith.constant 0 : i32
    %c0_i32_0 = arith.constant 0 : i32
    %c0_i32_1 = arith.constant 0 : i32
    return %c0_i32, %c0_i32_0 : i32, i32
  }
  func.func @transform_3(%arg0: i32) -> (i32, i32) {
    %c0_i32 = arith.constant 0 : i32
    %c0_i32_0 = arith.constant 0 : i32
    %c0_i32_1 = arith.constant 0 : i32
    return %c0_i32, %c0_i32_0 : i32, i32
  }
  func.func @transform_4(%arg0: i32) -> (i32, i32) {
    %c0_i32 = arith.constant 0 : i32
    %c0_i32_0 = arith.constant 0 : i32
    %c0_i32_1 = arith.constant 0 : i32
    return %c0_i32, %c0_i32_0 : i32, i32
  }
  func.func @transform_5(%arg0: i32) -> (i32, i32) {
    %c0_i32 = arith.constant 0 : i32
    %c0_i32_0 = arith.constant 0 : i32
    return %c0_i32, %arg0 : i32, i32
  }
}

</mosaic_0001>

<bundles_post_ra>
// kernel: tpu_custom_call.1
= control target key start
LH: loop header
LB: loop body
LE: loop exit
PB: predicated region body
PF: predicated region fallthrough
CT: control target
= control target key end

     0   :  { %v2127_v3 = vmov 0   ;;  %s2121_s0 = inlined_call_operand.vmem [shape: f32[4,128], index: 0, kind: input, shape index: {}]   ;;  %s2122_s1 = inlined_call_operand.vmem [shape: f32[256,4], index: 1, kind: input, shape index: {}]   ;;  %s2123_s2 = inlined_call_operand.vmem [shape: f32[256,1], index: 2, kind: input, shape index: {}]   ;;  %s2124_s3 = inlined_call_operand.vmem [shape: f32[8,256], index: 3, kind: input, shape index: {}]   ;;  %s2125_s4 = inlined_call_operand.vmem [shape: f32[8,1], index: 4, kind: input, shape index: {}]   ;;  %s2126_s5 = inlined_call_operand.hbm [shape: f32[8,128], index: 5, kind: output, shape index: {}]  }
   0x1   :  { %v1232_v0 = vld [vmem:[%s2122_s1 + $0x20] sm:$0xff]  ;;  %v1237_v1 = vld [vmem:[%s2122_s1 + $0x10] sm:$0xff]  ;;  %1154 = vset.pattern.permute.xlu2 %v2127_v3  ;;  %1153 = vset.pattern.permute.xlu1 %v2127_v3 }
   0x2   :  { %2161 = vst [vmem:[#allocation5_spill] sm:$0xff] %v1232_v0  ;;  %v1242_v2 = vld [vmem:[%s2122_s1] sm:$0xff]  ;;  %1152 = vset.pattern.permute.xlu0 %v2127_v3  ;;  %111 = vperm.xlu2 %1154, %v1232_v0  }
   0x3   :  { %2162 = vst [vmem:[#allocation6_spill] sm:$0xff] %v1237_v1  ;;  %101 = vperm.xlu1 %1153, %v1237_v1   ;;  %91 = vperm.xlu0 %1152, %v1242_v2  }
   0x4   :  { %10 = vsyncpa [#allocation3], 0  ;;  %v1253_v4 = vld [vmem:[%s2122_s1 + $0x28] sm:$0xff]  ;;  %v1258_v5 = vld [vmem:[%s2122_s1 + $0x18] sm:$0xff]  ;;  %s1198_s29 = smov [#allocation2]   ;;  %s1138_s8 = sshll.u32 %s2126_s5, 4  ;;  %s1139_s8 = int_to_ptr.hbm [resolvable:$true] %s1138_s8 }
   0x5   :  { %2163 = vst [vmem:[#allocation7_spill] sm:$0xff] %v1258_v5  ;;  %v1263_v6 = vld [vmem:[%s2122_s1 + $0x8] sm:$0xff]  ;;  %v1271_v7 = vld [vmem:[%s2122_s1 + $0x40] sm:$0xff]  ;;  %v1276_v8 = vld [vmem:[%s2122_s1 + $0x38] sm:$0xff]  ;;  %s1136_s30 = sshll.u32 %s1198_s29, 4  ;;  %s1137_s30 = int_to_ptr.vmem [resolvable:$true] %s1136_s30 }
   0x6   :  { %v1281_v9 = vld [vmem:[%s2122_s1 + $0x30] sm:$0xff]  ;;  %v1289_v10 = vld [vmem:[%s2122_s1 + $0x58] sm:$0xff]  ;;  %v1299_v12 = vld [vmem:[%s2122_s1 + $0x48] sm:$0xff] }
   0x7   :  { %2164 = vst [vmem:[#allocation8_spill] sm:$0xff] %v1289_v10  ;;  %v1294_v11 = vld [vmem:[%s2122_s1 + $0x50] sm:$0xff]  ;;  %v1312_v14 = vld [vmem:[%s2122_s1 + $0x68] sm:$0xff]  ;;  %v1317_v15 = vld [vmem:[%s2122_s1 + $0x60] sm:$0xff] }
   0x8   :  { %v1307_v13 = vld [vmem:[%s2122_s1 + $0x70] sm:$0xff]  ;;  %2166 = vst [vmem:[#allocation10_spill] sm:$0xff] %v1317_v15  ;;  %v1325_v16 = vld [vmem:[%s2122_s1 + $0x88] sm:$0xff]  ;;  %v1330_v17 = vld [vmem:[%s2122_s1 + $0x80] sm:$0xff] }
   0x9   :  { %2165 = vst [vmem:[#allocation9_spill] sm:$0xff] %v1307_v13  ;;  %v1335_v18 = vld [vmem:[%s2122_s1 + $0x78] sm:$0xff]  ;;  %v1343_v19 = vld [vmem:[%s2122_s1 + $0xa0] sm:$0xff]  ;;  %v1353_v21 = vld [vmem:[%s2122_s1 + $0x90] sm:$0xff] }
   0xa   :  { %116 = vperm.xlu2 %1154, %v1253_v4   ;;  %2167 = vst [vmem:[#allocation11_spill] sm:$0xff] %v1325_v16  ;;  %v1348_v20 = vld [vmem:[%s2122_s1 + $0x98] sm:$0xff]  ;;  %v1366_v23 = vld [vmem:[%s2122_s1 + $0xb0] sm:$0xff]  ;;  %v1371_v24 = vld [vmem:[%s2122_s1 + $0xa8] sm:$0xff] }
   0xb   :  { %106 = vperm.xlu1 %1153, %v1258_v5   ;;  %96 = vperm.xlu0 %1152, %v1263_v6   ;;  %2168 = vst [vmem:[#allocation12_spill] sm:$0xff] %v1330_v17  ;;  %v1361_v22 = vld [vmem:[%s2122_s1 + $0xb8] sm:$0xff]  ;;  %v1379_v25 = vld [vmem:[%s2122_s1 + $0xd0] sm:$0xff]  ;;  %v1384_v26 = vld [vmem:[%s2122_s1 + $0xc8] sm:$0xff] }
   0xc   :  { %2169 = vst [vmem:[#allocation13_spill] sm:$0xff] %v1335_v18  ;;  %v1389_v27 = vld [vmem:[%s2122_s1 + $0xc0] sm:$0xff]  ;;  %v1397_v28 = vld [vmem:[%s2122_s1 + $0xe8] sm:$0xff]  ;;  %v1407_v30 = vld [vmem:[%s2122_s1 + $0xd8] sm:$0xff] }
   0xd   :  { %2170 = vst [vmem:[#allocation14_spill] sm:$0xff] %v1343_v19  ;;  %v1402_v29 = vld [vmem:[%s2122_s1 + $0xe0] sm:$0xff]  ;;  %v1418_v32 = vld [vmem:[%s2122_s1 + $0xf8] sm:$0xff]  ;;  %v1423_v33 = vld [vmem:[%s2122_s1 + $0xf0] sm:$0xff] }
   0xe   :  { %2171 = vst [vmem:[#allocation15_spill] sm:$0xff] %v1348_v20  ;;  %v53_v31 = vld [vmem:[%s2123_s2] sm:$0xff]  ;;  %v56_v34 = vld [vmem:[%s2123_s2 + $0x18] sm:$0xff]  ;;  %v55_v35 = vld [vmem:[%s2123_s2 + $0x10] sm:$0xff] }
   0xf   :  { %2172 = vst [vmem:[#allocation16_spill] sm:$0xff] %v1353_v21  ;;  %v54_v36 = vld [vmem:[%s2123_s2 + $0x8] sm:$0xff]  ;;  %v59_v38 = vld [vmem:[%s2123_s2 + $0x30] sm:$0xff]  ;;  %v57_v40 = vld [vmem:[%s2123_s2 + $0x20] sm:$0xff] }
  0x10   :  { %2173 = vst [vmem:[#allocation17_spill] sm:$0xff] %v1361_v22  ;;  %v58_v39 = vld [vmem:[%s2123_s2 + $0x28] sm:$0xff]  ;;  %v61_v43 = vld [vmem:[%s2123_s2 + $0x40] sm:$0xff]  ;;  %v60_v44 = vld [vmem:[%s2123_s2 + $0x38] sm:$0xff] }
  0x11   :  { %2174 = vst [vmem:[#allocation18_spill] sm:$0xff] %v1366_v23  ;;  %v62_v42 = vld [vmem:[%s2123_s2 + $0x48] sm:$0xff]  ;;  %v65_v46 = vld [vmem:[%s2123_s2 + $0x60] sm:$0xff]  ;;  %v64_v47 = vld [vmem:[%s2123_s2 + $0x58] sm:$0xff] }
  0x12   :  { %131 = vperm.xlu2 %1154, %v1271_v7   ;;  %2175 = vst [vmem:[#allocation19_spill] sm:$0xff] %v1371_v24  ;;  %v63_v48 = vld [vmem:[%s2123_s2 + $0x50] sm:$0xff]  ;;  %v68_v52 = vld [vmem:[%s2123_s2 + $0x78] sm:$0xff]  ;;  %v66_v54 = vld [vmem:[%s2123_s2 + $0x68] sm:$0xff] }
  0x13   :  { %126 = vperm.xlu1 %1153, %v1276_v8   ;;  %121 = vperm.xlu0 %1152, %v1281_v9   ;;  %2176 = vst [vmem:[#allocation20_spill] sm:$0xff] %v1379_v25  ;;  %v67_v53 = vld [vmem:[%s2123_s2 + $0x70] sm:$0xff]  ;;  %v70_v59 = vld [vmem:[%s2123_s2 + $0x88] sm:$0xff]  ;;  %v69_v60 = vld [vmem:[%s2123_s2 + $0x80] sm:$0xff] }
  0x14   :  { %2177 = vst [vmem:[#allocation21_spill] sm:$0xff] %v1397_v28  ;;  %v71_v58 = vld [vmem:[%s2123_s2 + $0x90] sm:$0xff] }
  0x15   :  { %2178 = vst [vmem:[#allocation22_spill] sm:$0xff] %v1423_v33 }
  0x1a   :  { %146 = vperm.xlu2 %1154, %v1289_v10  }
  0x1b   :  { %141 = vperm.xlu1 %1153, %v1294_v11   ;;  %136 = vperm.xlu0 %1152, %v1299_v12  }
  0x22   :  { %161 = vperm.xlu2 %1154, %v1307_v13  }
  0x23   :  { %156 = vperm.xlu1 %1153, %v1312_v14   ;;  %151 = vperm.xlu0 %1152, %v1317_v15  }
  0x2a   :  { %176 = vperm.xlu2 %1154, %v1325_v16  }
  0x2b   :  { %171 = vperm.xlu1 %1153, %v1330_v17   ;;  %166 = vperm.xlu0 %1152, %v1335_v18  }
  0x32   :  { %191 = vperm.xlu2 %1154, %v1343_v19  }
  0x33   :  { %186 = vperm.xlu1 %1153, %v1348_v20   ;;  %181 = vperm.xlu0 %1152, %v1353_v21  }
  0x3a   :  { %206 = vperm.xlu2 %1154, %v1361_v22  }
  0x3b   :  { %201 = vperm.xlu1 %1153, %v1366_v23   ;;  %196 = vperm.xlu0 %1152, %v1371_v24  }
  0x42   :  { %221 = vperm.xlu2 %1154, %v1379_v25  }
  0x43   :  { %216 = vperm.xlu1 %1153, %v1384_v26   ;;  %211 = vperm.xlu0 %1152, %v1389_v27  }
  0x4a   :  { %236 = vperm.xlu2 %1154, %v1397_v28  }
  0x4b   :  { %231 = vperm.xlu1 %1153, %v1402_v29   ;;  %226 = vperm.xlu0 %1152, %v1407_v30  }
  0x52   :  { %284 = vperm.xlu2 %1154, %v53_v31   ;;  %v74_v31 = vld [vmem:[%s2123_s2 + $0xa8] sm:$0xff] }
  0x53   :  { %246 = vperm.xlu1 %1153, %v1418_v32   ;;  %241 = vperm.xlu0 %1152, %v1423_v33  }
  0x5a   :  { %299 = vperm.xlu2 %1154, %v56_v34   ;;  %v73_v34 = vld [vmem:[%s2123_s2 + $0xa0] sm:$0xff] }
  0x5b   :  { %294 = vperm.xlu1 %1153, %v55_v35   ;;  %289 = vperm.xlu0 %1152, %v54_v36   ;;  %v72_v35 = vld [vmem:[%s2123_s2 + $0x98] sm:$0xff] }
  0x5c   :  { %v1436_v37 = vpop.permute.xlu2 %111 }
  0x62   :  { %314 = vperm.xlu2 %1154, %v59_v38  }
  0x63   :  { %309 = vperm.xlu1 %1153, %v58_v39   ;;  %304 = vperm.xlu0 %1152, %v57_v40   ;;  %v77_v40 = vld [vmem:[%s2123_s2 + $0xc0] sm:$0xff] }
  0x64   :  { %v1447_v41 = vpop.permute.xlu2 %116 }
  0x65   :  { %2179 = vst [vmem:[#allocation23_spill] sm:$0xff] %v1447_v41 }
  0x6a   :  { %329 = vperm.xlu2 %1154, %v62_v42   ;;  %v76_v42 = vld [vmem:[%s2123_s2 + $0xb8] sm:$0xff] }
  0x6b   :  { %324 = vperm.xlu1 %1153, %v61_v43   ;;  %319 = vperm.xlu0 %1152, %v60_v44   ;;  %v75_v43 = vld [vmem:[%s2123_s2 + $0xb0] sm:$0xff] }
  0x6c   :  { %v1458_v45 = vpop.permute.xlu2 %131 }
  0x6d   :  { %2180 = vst [vmem:[#allocation24_spill] sm:$0xff] %v1458_v45 }
  0x72   :  { %344 = vperm.xlu2 %1154, %v65_v46  }
  0x73   :  { %339 = vperm.xlu1 %1153, %v64_v47   ;;  %334 = vperm.xlu0 %1152, %v63_v48   ;;  %v80_v48 = vld [vmem:[%s2123_s2 + $0xd8] sm:$0xff] }
  0x74   :  { %v1469_v49 = vpop.permute.xlu2 %146 }
  0x75   :  { %2181 = vst [vmem:[#allocation25_spill] sm:$0xff] %v1469_v49  ;;  %v1471_v50 = vpop.permute.xlu1 %101  ;;  %v1473_v51 = vpop.permute.xlu0 %91 }
  0x76   :  { %2182 = vst [vmem:[#allocation26_spill] sm:$0xff] %v1471_v50 }
  0x7a   :  { %359 = vperm.xlu2 %1154, %v68_v52   ;;  %v79_v52 = vld [vmem:[%s2123_s2 + $0xd0] sm:$0xff] }
  0x7b   :  { %354 = vperm.xlu1 %1153, %v67_v53   ;;  %349 = vperm.xlu0 %1152, %v66_v54   ;;  %v78_v53 = vld [vmem:[%s2123_s2 + $0xc8] sm:$0xff] }
  0x7c   :  { %v1484_v55 = vpop.permute.xlu2 %161 }
  0x7d   :  { %2183 = vst [vmem:[#allocation27_spill] sm:$0xff] %v1484_v55  ;;  %v1486_v56 = vpop.permute.xlu1 %106  ;;  %v1488_v57 = vpop.permute.xlu0 %96  ;;  %v1583_v55 = vld [vmem:[%s2121_s0] sm:$0xf] }
  0x7e   :  { %2184 = vst [vmem:[#allocation28_spill] sm:$0xff] %v1486_v56 }
  0x7f   :  { %2191 = vst [vmem:[#allocation35_spill] sm:$0xff] %v1583_v55 }
  0x82   :  { %374 = vperm.xlu2 %1154, %v71_v58  }
  0x83   :  { %369 = vperm.xlu1 %1153, %v70_v59   ;;  %364 = vperm.xlu0 %1152, %v69_v60   ;;  %v83_v60 = vld [vmem:[%s2123_s2 + $0xf0] sm:$0xff] }
  0x84   :  { %v1499_v61 = vpop.permute.xlu2 %176 }
  0x85   :  { %v1501_v62 = vpop.permute.xlu1 %126  ;;  %v1503_v63 = vpop.permute.xlu0 %121 }
  0x86   :  { %2185 = vst [vmem:[#allocation29_spill] sm:$0xff] %v1501_v62 }
  0x8a   :  { %389 = vperm.xlu2 %1154, %v74_v31   ;;  %v82_v31 = vld [vmem:[%s2123_s2 + $0xe8] sm:$0xff] }
  0x8b   :  { %384 = vperm.xlu1 %1153, %v73_v34   ;;  %379 = vperm.xlu0 %1152, %v72_v35   ;;  %v81_v34 = vld [vmem:[%s2123_s2 + $0xe0] sm:$0xff] }
  0x8c   :  { %v1514_v36 = vpop.permute.xlu2 %191 }
  0x8d   :  { %v1516_v38 = vpop.permute.xlu1 %141  ;;  %v137_v39 = vpop.permute.xlu0 %136 }
  0x8e   :  { %2186 = vst [vmem:[#allocation30_spill] sm:$0xff] %v1516_v38 }
  0x92   :  { %404 = vperm.xlu2 %1154, %v77_v40  }
  0x93   :  { %399 = vperm.xlu1 %1153, %v76_v42   ;;  %394 = vperm.xlu0 %1152, %v75_v43   ;;  %v84_v43 = vld [vmem:[%s2123_s2 + $0xf8] sm:$0xff] }
  0x94   :  { %v1527_v44 = vpop.permute.xlu2 %206 }
  0x95   :  { %v1529_v46 = vpop.permute.xlu1 %156  ;;  %v152_v47 = vpop.permute.xlu0 %151 }
  0x96   :  { %2187 = vst [vmem:[#allocation31_spill] sm:$0xff] %v1529_v46  ;;  %v1586_v46 = vperm.slane %v1583_v55, 0 }
  0x98   :  { %v259_v49 = vmul.f32 %v1586_v46, %v137_v39 }
  0x9a   :  { %419 = vperm.xlu2 %1154, %v80_v48   ;;  %v1195_v48 = vmov 1  }
  0x9b   :  { %414 = vperm.xlu1 %1153, %v79_v52   ;;  %409 = vperm.xlu0 %1152, %v78_v53  }
  0x9c   :  { %v1540_v54 = vpop.permute.xlu2 %221 }
  0x9d   :  { %v1542_v58 = vpop.permute.xlu1 %171  ;;  %v167_v59 = vpop.permute.xlu0 %166 }
  0x9e   :  { %2188 = vst [vmem:[#allocation32_spill] sm:$0xff] %v1542_v58 }
  0xa2   :  { %434 = vperm.xlu2 %1154, %v83_v60  }
  0xa3   :  { %429 = vperm.xlu1 %1153, %v82_v31   ;;  %424 = vperm.xlu0 %1152, %v81_v34  }
  0xa4   :  { %v1553_v35 = vpop.permute.xlu2 %236 }
  0xa5   :  { %v1555_v40 = vpop.permute.xlu1 %186  ;;  %v182_v42 = vpop.permute.xlu0 %181 }
  0xaa   :  { %1156 = vset.pattern.permute.xlu2 %v1195_v48 }
  0xab   :  { %1155 = vset.pattern.permute.xlu1 %v1195_v48  ;;  %439 = vperm.xlu0 %1152, %v84_v43  }
  0xac   :  { %479 = vperm.xlu2 %1156, %v1263_v6   ;;  %475 = vperm.xlu1 %1155, %v1242_v2   ;;  %v1562_v52 = vpop.permute.xlu2 %284 }
  0xad   :  { %2189 = vst [vmem:[#allocation33_spill] sm:$0xff] %v1562_v52  ;;  %v1564_v53 = vpop.permute.xlu1 %201  ;;  %v197_v60 = vpop.permute.xlu0 %196 }
  0xb3   :  { %1157 = vset.pattern.permute.xlu0 %v1195_v48 }
  0xb4   :  { %491 = vperm.xlu2 %1156, %v1232_v0   ;;  %487 = vperm.xlu1 %1155, %v1258_v5   ;;  %v1568_v31 = vpop.permute.xlu2 %299 }
  0xb5   :  { %2190 = vst [vmem:[#allocation34_spill] sm:$0xff] %v1568_v31  ;;  %483 = vperm.xlu0 %1157, %v1237_v1   ;;  %v1571_v34 = vpop.permute.xlu1 %216  ;;  %v212_v43 = vpop.permute.xlu0 %211  ;;  %v262_v31 = vmul.f32 %v1586_v46, %v152_v47 }
  0xbc   :  { %499 = vperm.xlu2 %1156, %v1281_v9   ;;  %495 = vperm.xlu1 %1155, %v1253_v4   ;;  %v1575_v3 = vpop.permute.xlu2 %314 }
  0xbd   :  { %503 = vperm.xlu0 %1157, %v1276_v8   ;;  %v1578_v48 = vpop.permute.xlu1 %231  ;;  %v227_v58 = vpop.permute.xlu0 %226 }
  0xc4   :  { %511 = vperm.xlu2 %1156, %v1299_v12   ;;  %507 = vperm.xlu1 %1155, %v1271_v7   ;;  %v330_v38 = vpop.permute.xlu2 %329 }
  0xc5   :  { %515 = vperm.xlu0 %1157, %v1294_v11   ;;  %v1592_v45 = vadd.f32 %v330_v38, %v259_v49  ;;  %v1594_v62 = vpop.permute.xlu1 %246  ;;  %v242_v41 = vpop.permute.xlu0 %241  ;;  %v265_v49 = vmul.f32 %v1586_v46, %v167_v59 }
  0xcc   :  { %523 = vperm.xlu2 %1156, %v1317_v15   ;;  %519 = vperm.xlu1 %1155, %v1289_v10   ;;  %v345_v50 = vpop.permute.xlu2 %344 }
  0xcd   :  { %527 = vperm.xlu0 %1157, %v1312_v14   ;;  %v1600_v39 = vadd.f32 %v345_v50, %v262_v31  ;;  %v1602_v56 = vpop.permute.xlu1 %294  ;;  %v1604_v52 = vpop.permute.xlu0 %289  ;;  %v268_v50 = vmul.f32 %v1586_v46, %v182_v42 }
  0xd4   :  { %535 = vperm.xlu2 %1156, %v1335_v18   ;;  %531 = vperm.xlu1 %1155, %v1307_v13   ;;  %v360_v38 = vpop.permute.xlu2 %359 }
  0xd5   :  { %539 = vperm.xlu0 %1157, %v1330_v17   ;;  %v1610_v47 = vadd.f32 %v360_v38, %v265_v49  ;;  %v1612_v10 = vpop.permute.xlu1 %309  ;;  %v1614_v15 = vpop.permute.xlu0 %304  ;;  %v271_v49 = vmul.f32 %v1586_v46, %v197_v60 }
  0xdc   :  { %547 = vperm.xlu2 %1156, %v1353_v21   ;;  %543 = vperm.xlu1 %1155, %v1325_v16   ;;  %v375_v59 = vpop.permute.xlu2 %374 }
  0xdd   :  { %551 = vperm.xlu0 %1157, %v1348_v20   ;;  %v1620_v31 = vadd.f32 %v375_v59, %v268_v50  ;;  %v1622_v13 = vpop.permute.xlu1 %324  ;;  %v1624_v18 = vpop.permute.xlu0 %319  ;;  %v274_v50 = vmul.f32 %v1586_v46, %v212_v43 }
  0xe4   :  { %559 = vperm.xlu2 %1156, %v1371_v24   ;;  %555 = vperm.xlu1 %1155, %v1343_v19   ;;  %v390_v42 = vpop.permute.xlu2 %389 }
  0xe5   :  { %563 = vperm.xlu0 %1157, %v1366_v23   ;;  %v1630_v38 = vadd.f32 %v390_v42, %v271_v49  ;;  %v1632_v16 = vpop.permute.xlu1 %339  ;;  %v1634_v21 = vpop.permute.xlu0 %334  ;;  %v277_v49 = vmul.f32 %v1586_v46, %v227_v58  ;;  %v267_v42 = vmul.f32 %v1586_v46, %v1499_v61  ;;  %v270_v58 = vmul.f32 %v1586_v46, %v1514_v36 }
  0xe6   :  { %v269_v61 = vmul.f32 %v1586_v46, %v1555_v40  ;;  %v1673_v36 = vperm.slane %v1583_v55, 1  ;;  %v273_v40 = vmul.f32 %v1586_v46, %v1527_v44 }
  0xec   :  { %571 = vperm.xlu2 %1156, %v1389_v27   ;;  %567 = vperm.xlu1 %1155, %v1361_v22   ;;  %v405_v60 = vpop.permute.xlu2 %404 }
  0xed   :  { %575 = vperm.xlu0 %1157, %v1384_v26   ;;  %v1640_v59 = vadd.f32 %v405_v60, %v274_v50  ;;  %v1642_v19 = vpop.permute.xlu1 %354  ;;  %v1644_v24 = vpop.permute.xlu0 %349 }
  0xee   :  { %2193 = vst [vmem:[#allocation37_spill] sm:$0xff] %v1642_v19  ;;  %v280_v19 = vmul.f32 %v1586_v46, %v242_v41 }
  0xef   :  { %2192 = vst [vmem:[#allocation36_spill] sm:$0xff] %v1640_v59 }
  0xf4   :  { %583 = vperm.xlu2 %1156, %v1407_v30   ;;  %579 = vperm.xlu1 %1155, %v1379_v25   ;;  %v420_v43 = vpop.permute.xlu2 %419 }
  0xf5   :  { %587 = vperm.xlu0 %1157, %v1402_v29   ;;  %v1652_v22 = vadd.f32 %v420_v43, %v277_v49  ;;  %v370_v50 = vpop.permute.xlu1 %369  ;;  %v1654_v60 = vpop.permute.xlu0 %364 }
  0xf6   :  { %v1656_v59 = vadd.f32 %v370_v50, %v267_v42 }
  0xfc   :  { %595 = vperm.xlu2 %1156, %v1423_v33   ;;  %591 = vperm.xlu1 %1155, %v1397_v28   ;;  %v435_v25 = vpop.permute.xlu2 %434  ;;  %v272_v28 = vmul.f32 %v1586_v46, %v1564_v53  ;;  %v1196_v33 = vmov 2  }
  0xfd   :  { %599 = vperm.xlu0 %1157, %v1418_v32   ;;  %v1666_v49 = vadd.f32 %v435_v25, %v280_v19  ;;  %v385_v43 = vpop.permute.xlu1 %384  ;;  %v380_v42 = vpop.permute.xlu0 %379  ;;  %v251_v19 = vmul.f32 %v1586_v46, %v1488_v57 }
  0xfe   :  { %v1668_v50 = vadd.f32 %v385_v43, %v270_v58  ;;  %v1670_v41 = vadd.f32 %v380_v42, %v269_v61 }
  0xff   :  { %v443_v43 = vadd.f32 %v1604_v52, %v251_v19 }
 0x104   :  { %1159 = vset.pattern.permute.xlu2 %v1196_v33  ;;  %1158 = vset.pattern.permute.xlu1 %v1196_v33 }
 0x105   :  { %1160 = vset.pattern.permute.xlu0 %v1196_v33  ;;  %v400_v25 = vpop.permute.xlu1 %399  ;;  %672 = vperm.xlu2 %1159, %v1263_v6   ;;  %v395_v58 = vpop.permute.xlu0 %394  ;;  %v276_v33 = vmul.f32 %v1586_v46, %v1540_v54  ;;  %v275_v6 = vmul.f32 %v1586_v46, %v1571_v34 }
 0x106   :  { %v1682_v61 = vadd.f32 %v400_v25, %v273_v40  ;;  %668 = vperm.xlu1 %1158, %v1242_v2   ;;  %676 = vperm.xlu0 %1160, %v1237_v1   ;;  %v1686_v44 = vadd.f32 %v395_v58, %v272_v28  ;;  %v480_v53 = vpop.permute.xlu2 %479  ;;  %v254_v2 = vmul.f32 %v1586_v46, %v1436_v37 }
 0x107   :  { %v604_v42 = vmul.f32 %v1673_v36, %v480_v53  ;;  %v279_v37 = vmul.f32 %v1586_v46, %v1553_v35  ;;  %v278_v58 = vmul.f32 %v1586_v46, %v1578_v48  ;;  %v256_v53 = vmul.f32 %v1586_v46, %v1503_v63 }
 0x108   :  { %v446_v54 = vadd.f32 %v1614_v15, %v254_v2  ;;  %v281_v63 = vmul.f32 %v1586_v46, %v1594_v62 }
 0x109   :  { %v1690_v55 = vadd.f32 %v604_v42, %v443_v43  ;;  %v448_v35 = vadd.f32 %v1575_v3, %v256_v53 }
 0x10d   :  { %v415_v57 = vpop.permute.xlu1 %414  ;;  %684 = vperm.xlu2 %1159, %v1232_v0   ;;  %v410_v28 = vpop.permute.xlu0 %409 }
 0x10e   :  { %v1699_v40 = vadd.f32 %v415_v57, %v276_v33  ;;  %680 = vperm.xlu1 %1158, %v1258_v5   ;;  %696 = vperm.xlu0 %1160, %v1276_v8   ;;  %v1703_v52 = vadd.f32 %v410_v28, %v275_v6  ;;  %v492_v19 = vpop.permute.xlu2 %491  ;;  %v250_v57 = vmul.f32 %v1586_v46, %v1473_v51 }
 0x10f   :  { %v607_v34 = vmul.f32 %v1673_v36, %v492_v19 }
 0x111   :  { %v1707_v25 = vadd.f32 %v607_v34, %v446_v54  ;;  %v2194_v34 = vld [vmem:[#allocation33_spill] sm:$0xff] }
 0x115   :  { %v430_v43 = vpop.permute.xlu1 %429  ;;  %692 = vperm.xlu2 %1159, %v1281_v9   ;;  %v425_v42 = vpop.permute.xlu0 %424 }
 0x116   :  { %v1716_v33 = vadd.f32 %v430_v43, %v279_v37  ;;  %688 = vperm.xlu1 %1158, %v1253_v4   ;;  %708 = vperm.xlu0 %1160, %v1294_v11   ;;  %v1720_v15 = vadd.f32 %v425_v42, %v278_v58  ;;  %v500_v6 = vpop.permute.xlu2 %499  ;;  %v442_v37 = vadd.f32 %v2194_v34, %v250_v57  ;;  %v2195_v43 = vld [vmem:[#allocation28_spill] sm:$0xff] }
 0x117   :  { %v609_v48 = vmul.f32 %v1673_v36, %v500_v6  ;;  %v253_v42 = vmul.f32 %v1586_v46, %v2195_v43  ;;  %v2196_v6 = vld [vmem:[#allocation10_spill] sm:$0xff] }
 0x119   :  { %v1724_v2 = vadd.f32 %v609_v48, %v448_v35  ;;  %v2197_v35 = vld [vmem:[#allocation26_spill] sm:$0xff] }
 0x11a   :  { %v252_v48 = vmul.f32 %v1586_v46, %v2197_v35 }
 0x11d   :  { %704 = vperm.xlu2 %1159, %v1299_v12   ;;  %v440_v28 = vpop.permute.xlu0 %439 }
 0x11e   :  { %700 = vperm.xlu1 %1158, %v1271_v7   ;;  %720 = vperm.xlu0 %1160, %v1312_v14   ;;  %v1733_v19 = vadd.f32 %v440_v28, %v281_v63  ;;  %v512_v3 = vpop.permute.xlu2 %511  ;;  %v476_v54 = vpop.permute.xlu1 %475  ;;  %v2198_v63 = vld [vmem:[#allocation8_spill] sm:$0xff] }
 0x11f   :  { %v612_v58 = vmul.f32 %v1673_v36, %v512_v3  ;;  %v603_v62 = vmul.f32 %v1673_v36, %v476_v54  ;;  %v2199_v3 = vld [vmem:[#allocation34_spill] sm:$0xff] }
 0x120   :  { %v445_v54 = vadd.f32 %v2199_v3, %v253_v42  ;;  %v2201_v42 = vld [vmem:[#allocation13_spill] sm:$0xff] }
 0x121   :  { %v1739_v53 = vadd.f32 %v612_v58, %v1592_v45  ;;  %v1741_v51 = vadd.f32 %v603_v62, %v442_v37  ;;  %v444_v58 = vadd.f32 %v1602_v56, %v252_v48  ;;  %v2203_v3 = vld [vmem:[#allocation9_spill] sm:$0xff] }
 0x125   :  { %716 = vperm.xlu2 %1159, %v2196_v6  }
 0x126   :  { %712 = vperm.xlu1 %1158, %v2198_v63   ;;  %732 = vperm.xlu0 %1160, %v1330_v17   ;;  %v524_v57 = vpop.permute.xlu2 %523  ;;  %v488_v28 = vpop.permute.xlu1 %487  ;;  %v2200_v17 = vld [vmem:[#allocation23_spill] sm:$0xff] }
 0x127   :  { %v615_v45 = vmul.f32 %v1673_v36, %v524_v57  ;;  %v606_v34 = vmul.f32 %v1673_v36, %v488_v28  ;;  %v484_v37 = vpop.permute.xlu0 %483  ;;  %v255_v0 = vmul.f32 %v1586_v46, %v2200_v17  ;;  %v2202_v57 = vld [vmem:[#allocation29_spill] sm:$0xff] }
 0x128   :  { %v605_v62 = vmul.f32 %v1673_v36, %v484_v37  ;;  %v257_v28 = vmul.f32 %v1586_v46, %v2202_v57 }
 0x129   :  { %v1756_v43 = vadd.f32 %v615_v45, %v1600_v39  ;;  %v1758_v35 = vadd.f32 %v606_v34, %v445_v54  ;;  %v447_v39 = vadd.f32 %v1612_v10, %v255_v0  ;;  %v2205_v0 = vld [vmem:[#allocation16_spill] sm:$0xff]  ;;  %v2206_v10 = vld [vmem:[#allocation30_spill] sm:$0xff] }
 0x12a   :  { %v1760_v5 = vadd.f32 %v605_v62, %v444_v58  ;;  %v449_v17 = vadd.f32 %v1624_v18, %v257_v28 }
 0x12d   :  { %728 = vperm.xlu2 %1159, %v2201_v42  }
 0x12e   :  { %724 = vperm.xlu1 %1158, %v2203_v3   ;;  %744 = vperm.xlu0 %1160, %v1348_v20   ;;  %v536_v56 = vpop.permute.xlu2 %535  ;;  %v496_v48 = vpop.permute.xlu1 %495  ;;  %v2204_v20 = vld [vmem:[#allocation24_spill] sm:$0xff] }
 0x12f   :  { %v618_v54 = vmul.f32 %v1673_v36, %v536_v56  ;;  %v608_v45 = vmul.f32 %v1673_v36, %v496_v48  ;;  %v504_v34 = vpop.permute.xlu0 %503  ;;  %v258_v1 = vmul.f32 %v1586_v46, %v2204_v20  ;;  %v260_v56 = vmul.f32 %v1586_v46, %v2206_v10  ;;  %v2207_v48 = vld [vmem:[#allocation11_spill] sm:$0xff] }
 0x130   :  { %v610_v37 = vmul.f32 %v1673_v36, %v504_v34 }
 0x131   :  { %v1775_v58 = vadd.f32 %v618_v54, %v1610_v47  ;;  %v1777_v62 = vadd.f32 %v608_v45, %v447_v39  ;;  %v450_v47 = vadd.f32 %v1622_v13, %v258_v1  ;;  %v452_v20 = vadd.f32 %v1634_v21, %v260_v56  ;;  %v2209_v1 = vld [vmem:[#allocation19_spill] sm:$0xff] }
 0x132   :  { %v1779_v57 = vadd.f32 %v610_v37, %v449_v17  ;;  %v2210_v13 = vld [vmem:[#allocation31_spill] sm:$0xff] }
 0x135   :  { %740 = vperm.xlu2 %1159, %v2205_v0  }
 0x136   :  { %736 = vperm.xlu1 %1158, %v2207_v48   ;;  %756 = vperm.xlu0 %1160, %v1366_v23   ;;  %v548_v18 = vpop.permute.xlu2 %547  ;;  %v508_v28 = vpop.permute.xlu1 %507  ;;  %v2208_v48 = vld [vmem:[#allocation25_spill] sm:$0xff] }
 0x137   :  { %v621_v39 = vmul.f32 %v1673_v36, %v548_v18  ;;  %v611_v54 = vmul.f32 %v1673_v36, %v508_v28  ;;  %v516_v45 = vpop.permute.xlu0 %515  ;;  %v261_v0 = vmul.f32 %v1586_v46, %v2208_v48  ;;  %v263_v18 = vmul.f32 %v1586_v46, %v2210_v13  ;;  %v2211_v28 = vld [vmem:[#allocation14_spill] sm:$0xff] }
 0x138   :  { %v613_v34 = vmul.f32 %v1673_v36, %v516_v45 }
 0x139   :  { %v1794_v17 = vadd.f32 %v621_v39, %v1620_v31  ;;  %v1796_v37 = vadd.f32 %v611_v54, %v450_v47  ;;  %v453_v31 = vadd.f32 %v1632_v16, %v261_v0  ;;  %v455_v48 = vadd.f32 %v1644_v24, %v263_v18  ;;  %v2214_v16 = vld [vmem:[#allocation32_spill] sm:$0xff] }
 0x13a   :  { %v1798_v10 = vadd.f32 %v613_v34, %v452_v20  ;;  %v266_v0 = vmul.f32 %v1586_v46, %v2214_v16 }
 0x13d   :  { %752 = vperm.xlu2 %1159, %v2209_v1  }
 0x13e   :  { %748 = vperm.xlu1 %1158, %v2211_v28   ;;  %768 = vperm.xlu0 %1160, %v1384_v26   ;;  %v560_v21 = vpop.permute.xlu2 %559  ;;  %v520_v56 = vpop.permute.xlu1 %519  ;;  %v2213_v28 = vld [vmem:[#allocation27_spill] sm:$0xff] }
 0x13f   :  { %v624_v47 = vmul.f32 %v1673_v36, %v560_v21  ;;  %v614_v39 = vmul.f32 %v1673_v36, %v520_v56  ;;  %v528_v54 = vpop.permute.xlu0 %527  ;;  %v264_v23 = vmul.f32 %v1586_v46, %v2213_v28  ;;  %v2215_v21 = vld [vmem:[#allocation17_spill] sm:$0xff]  ;;  %v458_v28 = vadd.f32 %v1654_v60, %v266_v0 }
 0x140   :  { %v616_v45 = vmul.f32 %v1673_v36, %v528_v54 }
 0x141   :  { %v1813_v20 = vadd.f32 %v624_v47, %v1630_v38  ;;  %v1815_v34 = vadd.f32 %v614_v39, %v453_v31  ;;  %v2216_v38 = vld [vmem:[#allocation37_spill] sm:$0xff] }
 0x142   :  { %v1817_v13 = vadd.f32 %v616_v45, %v455_v48  ;;  %v456_v56 = vadd.f32 %v2216_v38, %v264_v23  ;;  %v2217_v48 = vld [vmem:[#allocation36_spill] sm:$0xff] }
 0x143   :  { %2212 = vst [vmem:[#allocation33_spill] sm:$0xff] %v1815_v34  ;;  %v2218_v34 = vld [vmem:[#allocation20_spill] sm:$0xff] }
 0x145   :  { %764 = vperm.xlu2 %1159, %v1389_v27  }
 0x146   :  { %760 = vperm.xlu1 %1158, %v2215_v21   ;;  %780 = vperm.xlu0 %1160, %v1402_v29   ;;  %v572_v24 = vpop.permute.xlu2 %571  ;;  %v532_v18 = vpop.permute.xlu1 %531 }
 0x147   :  { %v627_v31 = vmul.f32 %v1673_v36, %v572_v24  ;;  %v617_v47 = vmul.f32 %v1673_v36, %v532_v18  ;;  %v540_v39 = vpop.permute.xlu0 %539 }
 0x148   :  { %v619_v54 = vmul.f32 %v1673_v36, %v540_v39  ;;  %v2220_v39 = vld [vmem:[#allocation22_spill] sm:$0xff] }
 0x149   :  { %v1832_v45 = vadd.f32 %v627_v31, %v2217_v48  ;;  %v1834_v46 = vadd.f32 %v617_v47, %v456_v56 }
 0x14a   :  { %v1836_v16 = vadd.f32 %v619_v54, %v458_v28  ;;  %v2221_v28 = vld [vmem:[#allocation21_spill] sm:$0xff]  ;;  %v1197_v54 = vmov 3  }
 0x14d   :  { %776 = vperm.xlu2 %1159, %v1407_v30  }
 0x14e   :  { %772 = vperm.xlu1 %1158, %v2218_v34   ;;  %792 = vperm.xlu0 %1160, %v1418_v32   ;;  %v584_v23 = vpop.permute.xlu2 %583  ;;  %v544_v24 = vpop.permute.xlu1 %543 }
 0x14f   :  { %v630_v18 = vmul.f32 %v1673_v36, %v584_v23  ;;  %v620_v60 = vmul.f32 %v1673_v36, %v544_v24  ;;  %v552_v0 = vpop.permute.xlu0 %551 }
 0x150   :  { %v622_v38 = vmul.f32 %v1673_v36, %v552_v0 }
 0x151   :  { %v1845_v56 = vadd.f32 %v630_v18, %v1652_v22  ;;  %v1848_v31 = vadd.f32 %v620_v60, %v1656_v59 }
 0x152   :  { %v1851_v47 = vadd.f32 %v622_v38, %v1670_v41  ;;  %v2222_v38 = vld [vmem:[#allocation35_spill] sm:$0xff] }
 0x153   :  { %2219 = vst [vmem:[#allocation28_spill] sm:$0xff] %v1845_v56  ;;  %v1869_v56 = vperm.slane %v2222_v38, 2 }
 0x155   :  { %788 = vperm.xlu2 %1159, %v2220_v39  }
 0x156   :  { %784 = vperm.xlu1 %1158, %v2221_v28   ;;  %1163 = vset.pattern.permute.xlu0 %v1197_v54  ;;  %v596_v48 = vpop.permute.xlu2 %595  ;;  %v556_v23 = vpop.permute.xlu1 %555 }
 0x157   :  { %v633_v24 = vmul.f32 %v1673_v36, %v596_v48  ;;  %v623_v0 = vmul.f32 %v1673_v36, %v556_v23  ;;  %985 = vperm.xlu0 %1163, %v1418_v32   ;;  %v564_v22 = vpop.permute.xlu0 %563 }
 0x158   :  { %v625_v59 = vmul.f32 %v1673_v36, %v564_v22 }
 0x159   :  { %v1860_v41 = vadd.f32 %v633_v24, %v1666_v49  ;;  %v1863_v18 = vadd.f32 %v623_v0, %v1668_v50 }
 0x15a   :  { %v1866_v60 = vadd.f32 %v625_v59, %v1686_v44 }
 0x15d   :  { %1162 = vset.pattern.permute.xlu2 %v1197_v54 }
 0x15e   :  { %1161 = vset.pattern.permute.xlu1 %v1197_v54  ;;  %917 = vperm.xlu2 %1162, %v2203_v3   ;;  %v568_v32 = vpop.permute.xlu1 %567 }
 0x15f   :  { %921 = vperm.xlu1 %1161, %v2201_v42   ;;  %v626_v48 = vmul.f32 %v1673_v36, %v568_v32  ;;  %905 = vperm.xlu0 %1163, %v2198_v63   ;;  %v576_v49 = vpop.permute.xlu0 %575  ;;  %v673_v50 = vpop.permute.xlu2 %672 }
 0x160   :  { %v628_v23 = vmul.f32 %v1673_v36, %v576_v49  ;;  %v797_v44 = vmul.f32 %v1869_v56, %v673_v50 }
 0x161   :  { %v1878_v24 = vadd.f32 %v626_v48, %v1682_v61 }
 0x162   :  { %v1881_v54 = vadd.f32 %v628_v23, %v1703_v52  ;;  %v1884_v3 = vadd.f32 %v797_v44, %v1690_v55 }
 0x166   :  { %981 = vperm.xlu2 %1162, %v2220_v39   ;;  %v580_v42 = vpop.permute.xlu1 %579 }
 0x167   :  { %913 = vperm.xlu1 %1161, %v1312_v14   ;;  %v629_v63 = vmul.f32 %v1673_v36, %v580_v42  ;;  %969 = vperm.xlu0 %1163, %v1407_v30   ;;  %v588_v0 = vpop.permute.xlu0 %587  ;;  %v685_v22 = vpop.permute.xlu2 %684 }
 0x168   :  { %v631_v61 = vmul.f32 %v1673_v36, %v588_v0  ;;  %v800_v59 = vmul.f32 %v1869_v56, %v685_v22 }
 0x169   :  { %v1893_v52 = vadd.f32 %v629_v63, %v1699_v40 }
 0x16a   :  { %v1896_v55 = vadd.f32 %v631_v61, %v1720_v15  ;;  %v1899_v39 = vadd.f32 %v800_v59, %v1707_v25 }
 0x16e   :  { %977 = vperm.xlu2 %1162, %v2221_v28   ;;  %v592_v14 = vpop.permute.xlu1 %591 }
 0x16f   :  { %909 = vperm.xlu1 %1161, %v2196_v6   ;;  %v632_v30 = vmul.f32 %v1673_v36, %v592_v14  ;;  %893 = vperm.xlu0 %1163, %v1271_v7   ;;  %v600_v32 = vpop.permute.xlu0 %599  ;;  %v693_v48 = vpop.permute.xlu2 %692 }
 0x170   :  { %v634_v40 = vmul.f32 %v1673_v36, %v600_v32  ;;  %v802_v49 = vmul.f32 %v1869_v56, %v693_v48  ;;  %v2225_v48 = vld [vmem:[#allocation18_spill] sm:$0xff] }
 0x171   :  { %v1908_v15 = vadd.f32 %v632_v30, %v1716_v33 }
 0x172   :  { %v1911_v25 = vadd.f32 %v634_v40, %v1733_v19  ;;  %v1914_v28 = vadd.f32 %v802_v49, %v1724_v2  ;;  %v2226_v40 = vld [vmem:[#allocation16_spill] sm:$0xff] }
 0x176   :  { %901 = vperm.xlu2 %1162, %v1294_v11  }
 0x177   :  { %973 = vperm.xlu1 %1161, %v1402_v29   ;;  %957 = vperm.xlu0 %1163, %v1389_v27   ;;  %v705_v7 = vpop.permute.xlu2 %704 }
 0x178   :  { %v805_v36 = vmul.f32 %v1869_v56, %v705_v7  ;;  %v669_v6 = vpop.permute.xlu1 %668  ;;  %v677_v50 = vpop.permute.xlu0 %676 }
 0x179   :  { %v796_v33 = vmul.f32 %v1869_v56, %v669_v6  ;;  %v798_v23 = vmul.f32 %v1869_v56, %v677_v50 }
 0x17a   :  { %v1923_v19 = vadd.f32 %v805_v36, %v1739_v53 }
 0x17b   :  { %v1926_v2 = vadd.f32 %v796_v33, %v1741_v51  ;;  %v1929_v11 = vadd.f32 %v798_v23, %v1760_v5 }
 0x17e   :  { %965 = vperm.xlu2 %1162, %v2218_v34  }
 0x17f   :  { %897 = vperm.xlu1 %1161, %v1299_v12   ;;  %881 = vperm.xlu0 %1163, %v1253_v4   ;;  %v717_v27 = vpop.permute.xlu2 %716 }
 0x180   :  { %v808_v29 = vmul.f32 %v1869_v56, %v717_v27  ;;  %v681_v44 = vpop.permute.xlu1 %680  ;;  %v697_v42 = vpop.permute.xlu0 %696  ;;  %v2228_v27 = vld [vmem:[#allocation14_spill] sm:$0xff] }
 0x181   :  { %v799_v53 = vmul.f32 %v1869_v56, %v681_v44  ;;  %v803_v63 = vmul.f32 %v1869_v56, %v697_v42  ;;  %v2230_v44 = vld [vmem:[#allocation12_spill] sm:$0xff] }
 0x182   :  { %v1938_v51 = vadd.f32 %v808_v29, %v1756_v43  ;;  %v2229_v29 = vld [vmem:[#allocation7_spill] sm:$0xff] }
 0x183   :  { %v1941_v5 = vadd.f32 %v799_v53, %v1758_v35  ;;  %v1944_v34 = vadd.f32 %v803_v63, %v1779_v57 }
 0x186   :  { %889 = vperm.xlu2 %1162, %v1276_v8  }
 0x187   :  { %961 = vperm.xlu1 %1161, %v1384_v26   ;;  %945 = vperm.xlu0 %1163, %v2209_v1   ;;  %v729_v4 = vpop.permute.xlu2 %728  ;;  %v2223_v26 = vld [vmem:[#allocation6_spill] sm:$0xff] }
 0x188   :  { %v811_v12 = vmul.f32 %v1869_v56, %v729_v4  ;;  %v689_v0 = vpop.permute.xlu1 %688  ;;  %v709_v22 = vpop.permute.xlu0 %708 }
 0x189   :  { %v801_v43 = vmul.f32 %v1869_v56, %v689_v0  ;;  %v806_v61 = vmul.f32 %v1869_v56, %v709_v22  ;;  %v2231_v22 = vld [vmem:[#allocation15_spill] sm:$0xff] }
 0x18a   :  { %v1953_v35 = vadd.f32 %v811_v12, %v1775_v58 }
 0x18b   :  { %v1956_v57 = vadd.f32 %v801_v43, %v1777_v62  ;;  %v1959_v8 = vadd.f32 %v806_v61, %v1798_v10  ;;  %v2232_v61 = vmov 0  }
 0x18e   :  { %953 = vperm.xlu2 %1162, %v2215_v21  }
 0x18f   :  { %885 = vperm.xlu1 %1161, %v1281_v9   ;;  %869 = vperm.xlu0 %1163, %v2223_v26   ;;  %v741_v1 = vpop.permute.xlu2 %740  ;;  %v2224_v9 = vld [vmem:[#allocation5_spill] sm:$0xff] }
 0x190   :  { %v814_v59 = vmul.f32 %v1869_v56, %v741_v1  ;;  %v701_v14 = vpop.permute.xlu1 %700  ;;  %v721_v30 = vpop.permute.xlu0 %720 }
 0x191   :  { %v804_v58 = vmul.f32 %v1869_v56, %v701_v14  ;;  %v809_v32 = vmul.f32 %v1869_v56, %v721_v30  ;;  %v2233_v30 = vld [vmem:[#allocation11_spill] sm:$0xff] }
 0x192   :  { %v1968_v62 = vadd.f32 %v814_v59, %v1794_v17 }
 0x193   :  { %v1971_v10 = vadd.f32 %v804_v58, %v1796_v37  ;;  %v1974_v21 = vadd.f32 %v809_v32, %v1817_v13  ;;  %v2227_v13 = vld [vmem:[#allocation33_spill] sm:$0xff]  ;;  %v1167_v58 = vld [vmem:[%s2122_s1] sm:$0xff] }
 0x196   :  { %877 = vperm.xlu2 %1162, %v2224_v9  }
 0x197   :  { %949 = vperm.xlu1 %1161, %v2225_v48   ;;  %933 = vperm.xlu0 %1163, %v2226_v40   ;;  %v753_v49 = vpop.permute.xlu2 %752 }
 0x198   :  { %v817_v7 = vmul.f32 %v1869_v56, %v753_v49  ;;  %v713_v36 = vpop.permute.xlu1 %712  ;;  %v733_v6 = vpop.permute.xlu0 %732 }
 0x199   :  { %v807_v17 = vmul.f32 %v1869_v56, %v713_v36  ;;  %v812_v50 = vmul.f32 %v1869_v56, %v733_v6 }
 0x19a   :  { %v1983_v37 = vadd.f32 %v817_v7, %v1813_v20 }
 0x19b   :  { %v1986_v33 = vadd.f32 %v807_v17, %v2227_v13  ;;  %v1989_v23 = vadd.f32 %v812_v50, %v1836_v16  ;;  %v1166_v16 = vld [vmem:[%s2122_s1 + $0x8] sm:$0xff] }
 0x19e   :  { %941 = vperm.xlu2 %1162, %v2228_v27  }
 0x19f   :  { %873 = vperm.xlu1 %1161, %v2229_v29   ;;  %925 = vperm.xlu0 %1163, %v2230_v44   ;;  %v765_v42 = vpop.permute.xlu2 %764 }
 0x1a0   :  { %v820_v53 = vmul.f32 %v1869_v56, %v765_v42  ;;  %v725_v63 = vpop.permute.xlu1 %724  ;;  %v745_v4 = vpop.permute.xlu0 %744 }
 0x1a1   :  { %v815_v20 = vmul.f32 %v1869_v56, %v745_v4 }
 0x1a2   :  { %v1997_v12 = vadd.f32 %v820_v53, %v1832_v45 }
 0x1a3   :  { %v2000_v0 = vadd.f32 %v815_v20, %v1851_v47 }
 0x1a6   :  { %865 = vperm.xlu2 %1162, %v1166_v16  }
 0x1a7   :  { %937 = vperm.xlu1 %1161, %v2231_v22   ;;  %v2006_v43 = vpop.permute.xlu2 %776  ;;  %1165 = vset.pattern.permute.xlu0 %v2232_v61 }
 0x1a8   :  { %v737_v26 = vpop.permute.xlu1 %736  ;;  %v757_v1 = vpop.permute.xlu0 %756 }
 0x1a9   :  { %v813_v59 = vmul.f32 %v1869_v56, %v737_v26  ;;  %v818_v45 = vmul.f32 %v1869_v56, %v757_v1 }
 0x1ab   :  { %v2012_v47 = vadd.f32 %v813_v59, %v1848_v31  ;;  %v2015_v14 = vadd.f32 %v818_v45, %v1866_v60  ;;  %v810_v45 = vmul.f32 %v1869_v56, %v725_v63 }
 0x1ae   :  { %929 = vperm.xlu2 %1162, %v2233_v30  }
 0x1af   :  { %861 = vperm.xlu1 %1161, %v1167_v58   ;;  %v789_v32 = vpop.permute.xlu2 %788 }
 0x1b0   :  { %v749_v9 = vpop.permute.xlu1 %748  ;;  %v769_v48 = vpop.permute.xlu0 %768  ;;  %v826_v44 = vmul.f32 %v1869_v56, %v789_v32 }
 0x1b1   :  { %v816_v40 = vmul.f32 %v1869_v56, %v749_v9  ;;  %v821_v49 = vmul.f32 %v1869_v56, %v769_v48 }
 0x1b3   :  { %v2024_v31 = vadd.f32 %v816_v40, %v1863_v18  ;;  %v2027_v60 = vadd.f32 %v821_v49, %v1881_v54  ;;  %v2036_v18 = vperm.slane %v2222_v38, 3  ;;  %v842_v40 = vadd.f32 %v810_v45, %v1834_v46 }
 0x1b7   :  { %1164 = vset.pattern.permute.xlu1 %v2232_v61 }
 0x1b8   :  { %v761_v7 = vpop.permute.xlu1 %760  ;;  %v781_v36 = vpop.permute.xlu0 %780 }
 0x1b9   :  { %v819_v6 = vmul.f32 %v1869_v56, %v761_v7  ;;  %v918_v17 = vpop.permute.xlu2 %917 }
 0x1ba   :  { %v1003_v32 = vmul.f32 %v2036_v18, %v918_v17 }
 0x1bb   :  { %v2032_v50 = vadd.f32 %v819_v6, %v1878_v24  ;;  %v858_v24 = vadd.f32 %v826_v44, %v1860_v41 }
 0x1bc   :  { %v1035_v6 = vadd.f32 %v1003_v32, %v842_v40 }
 0x1c0   :  { %v773_v13 = vpop.permute.xlu1 %772  ;;  %v793_v27 = vpop.permute.xlu0 %792 }
 0x1c1   :  { %v982_v29 = vpop.permute.xlu2 %981  ;;  %v827_v54 = vmul.f32 %v1869_v56, %v793_v27  ;;  %v1067_v27 = vmax.f32 %v1035_v6, 0.0 }
 0x1c2   :  { %v1019_v42 = vmul.f32 %v2036_v18, %v982_v29 }
 0x1c3   :  { %v859_v26 = vadd.f32 %v827_v54, %v1911_v25 }
 0x1c4   :  { %v1051_v59 = vadd.f32 %v1019_v42, %v858_v24 }
 0x1c6   :  { %v1083_v9 = vmax.f32 %v1051_v59, 0.0  ;;  %v822_v59 = vmul.f32 %v1869_v56, %v773_v13 }
 0x1c8   :  { %v785_v53 = vpop.permute.xlu1 %784 }
 0x1c9   :  { %v825_v4 = vmul.f32 %v1869_v56, %v785_v53  ;;  %v978_v20 = vpop.permute.xlu2 %977  ;;  %v986_v16 = vpop.permute.xlu0 %985 }
 0x1ca   :  { %v1018_v22 = vmul.f32 %v2036_v18, %v978_v20  ;;  %v1020_v61 = vmul.f32 %v2036_v18, %v986_v16 }
 0x1cb   :  { %v857_v38 = vadd.f32 %v825_v4, %v1908_v15 }
 0x1cc   :  { %v1052_v1 = vadd.f32 %v1020_v61, %v859_v26  ;;  %v823_v61 = vmul.f32 %v1869_v56, %v2006_v43 }
 0x1cd   :  { %v1050_v58 = vadd.f32 %v1018_v22, %v857_v38 }
 0x1ce   :  { %v1084_v30 = vmax.f32 %v1052_v1, 0.0 }
 0x1cf   :  { %v1082_v25 = vmax.f32 %v1050_v58, 0.0  ;;  %v2234_v58 = vld [vmem:[#allocation28_spill] sm:$0xff] }
 0x1d0   :  { %1110 = vmatpush.msra.mxu1 %v1084_v30  ;;  %v855_v32 = vadd.f32 %v823_v61, %v2234_v58 }
 0x1d1   :  { %v902_v48 = vpop.permute.xlu2 %901  ;;  %v922_v41 = vpop.permute.xlu1 %921 }
 0x1d2   :  { %v1004_v49 = vmul.f32 %v2036_v18, %v922_v41  ;;  %v906_v7 = vpop.permute.xlu0 %905  ;;  %1111 = vmatpush.msra.mxu1 %v1083_v9  ;;  %v999_v20 = vmul.f32 %v2036_v18, %v902_v48 }
 0x1d3   :  { %v1000_v53 = vmul.f32 %v2036_v18, %v906_v7 }
 0x1d4   :  { %1112 = vmatpush.msra.mxu1 %v1082_v25  ;;  %v1036_v15 = vadd.f32 %v1004_v49, %v1953_v35  ;;  %v1031_v1 = vadd.f32 %v999_v20, %v1959_v8  ;;  %v854_v8 = vadd.f32 %v822_v59, %v1893_v52 }
 0x1d5   :  { %v1032_v22 = vadd.f32 %v1000_v53, %v1986_v33 }
 0x1d6   :  { %v1068_v63 = vmax.f32 %v1036_v15, 0.0 }
 0x1d7   :  { %v1064_v30 = vmax.f32 %v1032_v22, 0.0 }
 0x1d8   :  { %1090 = vmatpush.msra.mxu0 %v1068_v63 }
 0x1d9   :  { %v914_v29 = vpop.permute.xlu1 %913  ;;  %v966_v54 = vpop.permute.xlu2 %965 }
 0x1da   :  { %v1002_v17 = vmul.f32 %v2036_v18, %v914_v29  ;;  %v970_v44 = vpop.permute.xlu0 %969  ;;  %1091 = vmatpush.msra.mxu0 %v1067_v27  ;;  %v1015_v9 = vmul.f32 %v2036_v18, %v966_v54 }
 0x1db   :  { %v1016_v45 = vmul.f32 %v2036_v18, %v970_v44 }
 0x1dc   :  { %v1034_v46 = vadd.f32 %v1002_v17, %v1974_v21  ;;  %v824_v21 = vmul.f32 %v1869_v56, %v781_v36  ;;  %v1063_v36 = vmax.f32 %v1031_v1, 0.0  ;;  %v1047_v40 = vadd.f32 %v1015_v9, %v854_v8 }
 0x1dd   :  { %v1048_v13 = vadd.f32 %v1016_v45, %v855_v32 }
 0x1de   :  { %v1066_v42 = vmax.f32 %v1034_v46, 0.0  ;;  %v856_v33 = vadd.f32 %v824_v21, %v1896_v55  ;;  %v1079_v27 = vmax.f32 %v1047_v40, 0.0 }
 0x1df   :  { %v1080_v25 = vmax.f32 %v1048_v13, 0.0 }
 0x1e0   :  { %1092 = vmatpush.msra.mxu0 %v1066_v42 }
 0x1e1   :  { %v910_v4 = vpop.permute.xlu1 %909  ;;  %v890_v26 = vpop.permute.xlu2 %889 }
 0x1e2   :  { %v1001_v35 = vmul.f32 %v2036_v18, %v910_v4  ;;  %v894_v16 = vpop.permute.xlu0 %893  ;;  %v996_v15 = vmul.f32 %v2036_v18, %v890_v26 }
 0x1e3   :  { %v997_v7 = vmul.f32 %v2036_v18, %v894_v16 }
 0x1e4   :  { %v1033_v24 = vadd.f32 %v1001_v35, %v1938_v51  ;;  %v1028_v44 = vadd.f32 %v996_v15, %v1944_v34 }
 0x1e5   :  { %v1029_v29 = vadd.f32 %v997_v7, %v1971_v10 }
 0x1e6   :  { %v1065_v38 = vmax.f32 %v1033_v24, 0.0  ;;  %v1060_v35 = vmax.f32 %v1028_v44, 0.0 }
 0x1e7   :  { %v1061_v46 = vmax.f32 %v1029_v29, 0.0 }
 0x1e8   :  { %1093 = vmatpush.msra.mxu0 %v1065_v38 }
 0x1e9   :  { %v974_v51 = vpop.permute.xlu1 %973  ;;  %v954_v49 = vpop.permute.xlu2 %953 }
 0x1ea   :  { %v1017_v43 = vmul.f32 %v2036_v18, %v974_v51  ;;  %v958_v48 = vpop.permute.xlu0 %957  ;;  %1094 = vmatpush.msra.mxu0 %v1064_v30  ;;  %v1012_v4 = vmul.f32 %v2036_v18, %v954_v49 }
 0x1eb   :  { %v1013_v54 = vmul.f32 %v2036_v18, %v958_v48 }
 0x1ec   :  { %1095 = vmatpush.msra.mxu0 %v1063_v36  ;;  %v1049_v56 = vadd.f32 %v1017_v43, %v856_v33  ;;  %v1044_v34 = vadd.f32 %v1012_v4, %v2032_v50  ;;  %v87_v33 = vld [vmem:[%s2125_s4] sm:$0xff] }
 0x1ed   :  { %v1045_v10 = vadd.f32 %v1013_v54, %v1997_v12  ;;  %1087 = vperm.xlu1 %1164, %v87_v33  }
 0x1ee   :  { %v1081_v41 = vmax.f32 %v1049_v56, 0.0  ;;  %v1076_v1 = vmax.f32 %v1044_v34, 0.0 }
 0x1ef   :  { %v1077_v61 = vmax.f32 %v1045_v10, 0.0 }
 0x1f0   :  { %1113 = vmatpush.msra.mxu1 %v1081_v41 }
 0x1f1   :  { %v898_v55 = vpop.permute.xlu1 %897  ;;  %v878_v42 = vpop.permute.xlu2 %877 }
 0x1f2   :  { %v998_v6 = vmul.f32 %v2036_v18, %v898_v55  ;;  %v882_v63 = vpop.permute.xlu0 %881  ;;  %1114 = vmatpush.msra.mxu1 %v1080_v25  ;;  %v993_v21 = vmul.f32 %v2036_v18, %v878_v42 }
 0x1f3   :  { %v994_v22 = vmul.f32 %v2036_v18, %v882_v63 }
 0x1f4   :  { %1115 = vmatpush.msra.mxu1 %v1079_v27  ;;  %v1030_v52 = vadd.f32 %v998_v6, %v1923_v19  ;;  %v1025_v50 = vadd.f32 %v993_v21, %v1899_v39 }
 0x1f5   :  { %v1026_v12 = vadd.f32 %v994_v22, %v1956_v57 }
 0x1f6   :  { %v1062_v17 = vmax.f32 %v1030_v52, 0.0 }
 0x1f7   :  { %v1058_v32 = vmax.f32 %v1026_v12, 0.0 }
 0x1f8   :  { %1096 = vmatpush.msra.mxu0 %v1062_v17 }
 0x1f9   :  { %v962_v53 = vpop.permute.xlu1 %961  ;;  %v942_v59 = vpop.permute.xlu2 %941 }
 0x1fa   :  { %v1014_v20 = vmul.f32 %v2036_v18, %v962_v53  ;;  %1097 = vmatpush.msra.mxu0 %v1061_v46  ;;  %v946_v16 = vpop.permute.xlu0 %945  ;;  %v1009_v9 = vmul.f32 %v2036_v18, %v942_v59 }
 0x1fb   :  { %v1010_v58 = vmul.f32 %v2036_v18, %v946_v16 }
 0x1fc   :  { %1098 = vmatpush.msra.mxu0 %v1060_v35  ;;  %v1046_v19 = vadd.f32 %v1014_v20, %v2027_v60  ;;  %v1041_v8 = vadd.f32 %v1009_v9, %v2024_v31 }
 0x1fd   :  { %v1042_v39 = vadd.f32 %v1010_v58, %v1983_v37 }
 0x1fe   :  { %v1078_v24 = vmax.f32 %v1046_v19, 0.0  ;;  %v1073_v25 = vmax.f32 %v1041_v8, 0.0 }
 0x1ff   :  { %v1074_v41 = vmax.f32 %v1042_v39, 0.0 }
 0x200   :  { %1116 = vmatpush.msra.mxu1 %v1078_v24 }
 0x201   :  { %v886_v26 = vpop.permute.xlu1 %885  ;;  %v866_v48 = vpop.permute.xlu2 %865 }
 0x202   :  { %v995_v38 = vmul.f32 %v2036_v18, %v886_v26  ;;  %1117 = vmatpush.msra.mxu1 %v1077_v61  ;;  %v870_v45 = vpop.permute.xlu0 %869  ;;  %v990_v49 = vmul.f32 %v2036_v18, %v866_v48 }
 0x203   :  { %v991_v13 = vmul.f32 %v2036_v18, %v870_v45 }
 0x204   :  { %1118 = vmatpush.msra.mxu1 %v1076_v1  ;;  %v1027_v60 = vadd.f32 %v995_v38, %v1914_v28  ;;  %v1057_v28 = vmax.f32 %v1025_v50, 0.0  ;;  %v1022_v31 = vadd.f32 %v990_v49, %v1884_v3 }
 0x205   :  { %v1023_v37 = vadd.f32 %v991_v13, %v1929_v11 }
 0x206   :  { %v1059_v30 = vmax.f32 %v1027_v60, 0.0  ;;  %v1054_v44 = vmax.f32 %v1022_v31, 0.0 }
 0x207   :  { %v1055_v63 = vmax.f32 %v1023_v37, 0.0 }
 0x208   :  { %1099 = vmatpush.msra.mxu0 %v1059_v30 }
 0x209   :  { %v950_v51 = vpop.permute.xlu1 %949  ;;  %v930_v15 = vpop.permute.xlu2 %929 }
 0x20a   :  { %v1011_v43 = vmul.f32 %v2036_v18, %v950_v51  ;;  %1100 = vmatpush.msra.mxu0 %v1058_v32  ;;  %v934_v56 = vpop.permute.xlu0 %933  ;;  %v1006_v29 = vmul.f32 %v2036_v18, %v930_v15 }
 0x20b   :  { %v1007_v6 = vmul.f32 %v2036_v18, %v934_v56 }
 0x20c   :  { %1101 = vmatpush.msra.mxu0 %v1057_v28  ;;  %v1043_v57 = vadd.f32 %v1011_v43, %v2015_v14  ;;  %v1038_v46 = vadd.f32 %v1006_v29, %v2012_v47  ;;  %v85_v47 = vld [vmem:[%s2124_s3] sm:$0xff] }
 0x20d   :  { %v1039_v3 = vadd.f32 %v1007_v6, %v1968_v62  ;;  %v86_v62 = vld [vmem:[%s2124_s3 + $0x8] sm:$0xff] }
 0x20e   :  { %v1075_v36 = vmax.f32 %v1043_v57, 0.0  ;;  %v1070_v35 = vmax.f32 %v1038_v46, 0.0 }
 0x20f   :  { %v1071_v42 = vmax.f32 %v1039_v3, 0.0 }
 0x210   :  { %1119 = vmatpush.msra.mxu1 %v1075_v36 }
 0x211   :  { %v874_v40 = vpop.permute.xlu1 %873 }
 0x212   :  { %v992_v7 = vmul.f32 %v2036_v18, %v874_v40  ;;  %1120 = vmatpush.msra.mxu1 %v1074_v41  ;;  %v926_v27 = vpop.permute.xlu0 %925 }
 0x214   :  { %1121 = vmatpush.msra.mxu1 %v1073_v25  ;;  %v1024_v14 = vadd.f32 %v992_v7, %v1941_v5  ;;  %v1005_v5 = vmul.f32 %v2036_v18, %v926_v27 }
 0x216   :  { %v1056_v55 = vmax.f32 %v1024_v14, 0.0  ;;  %v1037_v53 = vadd.f32 %v1005_v5, %v1989_v23 }
 0x218   :  { %1102 = vmatpush.msra.mxu0 %v1056_v55  ;;  %v1069_v16 = vmax.f32 %v1037_v53, 0.0 }
 0x219   :  { %v938_v52 = vpop.permute.xlu1 %937 }
 0x21a   :  { %v1008_v17 = vmul.f32 %v2036_v18, %v938_v52  ;;  %1103 = vmatpush.msra.mxu0 %v1055_v63 }
 0x21c   :  { %1104 = vmatpush.msra.mxu0 %v1054_v44  ;;  %v1040_v11 = vadd.f32 %v1008_v17, %v2000_v0 }
 0x21e   :  { %v1072_v54 = vmax.f32 %v1040_v11, 0.0 }
 0x220   :  { %1122 = vmatpush.msra.mxu1 %v1072_v54 }
 0x221   :  { %v862_v4 = vpop.permute.xlu1 %861 }
 0x222   :  { %v989_v20 = vmul.f32 %v2036_v18, %v862_v4  ;;  %1123 = vmatpush.msra.mxu1 %v1071_v42 }
 0x224   :  { %1124 = vmatpush.msra.mxu1 %v1070_v35  ;;  %v1021_v19 = vadd.f32 %v989_v20, %v1926_v2 }
 0x226   :  { %1125 = vmatpush.msra.mxu1 %v1069_v16  ;;  %v1053_v0 = vmax.f32 %v1021_v19, 0.0 }
 0x227   :  { %1126 = vmatmul.f32.vlgmr.msra.gmra.mxu1 %v86_v62 }
 0x228   :  { %1105 = vmatpush.msra.mxu0 %v1053_v0 }
 0x229   :  { %1106 = vmatmul.f32.vlgmr.msra.gmra.mxu0 %v85_v47 }
 0x25f   :  { %v1088_v23 = vpop.permute.xlu1 %1087 }
 0x2a4   :  { %v1127_v10 = vpop.f32.mrf.mxu1 }
 0x2a6   :  { %v1107_v18 = vpop.f32.mrf.mxu0 }
 0x2a7   :  { %v1108_v2 = vadd.f32 %v1107_v18, %v1088_v23 }
 0x2a9   :  { %v1128_v24 = vadd.f32 %v1127_v10, %v1108_v2 }
 0x2ab   :  { %1130 = vst [vmem:[#allocation2] sm:$0xff] %v1128_v24 }
 0x2ac   :  { %1141 = dma.vmem_to_hbm [thread:$0]  %s1137_s30, 128, %s1139_s8, [#allocation3]  }
 0x2ad   :  { %1192 = dma.done.wait [#allocation3], 128  }
 0x2ae   :  { %1193 = vsyncadd [#allocation3], 4294967168 }
 0x2af   :  { %1146 = vsyncpa [#allocation3], 1 }

</bundles_post_ra>
